<compile_context>
chip_gen: v7x
topology: tpu7x:2x2x1
jax: 0.10.0
libtpu: 0.0.40
codegen_flags: <defaults>
</compile_context>

<pallas_src>
import jax
import jax.numpy as jnp
from jax.experimental import pallas as pl
from jax.experimental.pallas import tpu as pltpu

LANES = 128                       # lane-dense width for intermediates + output

# Logical widths of the original PyTorch module.
D_IN, D_H1, D_H2, D_ACT, D_H3 = 4, 25, 50, 2, 25
D_HEAD = D_ACT + D_H3             # 27 fused-head columns (actor | l3)
CRIT_COL = D_ACT                  # packed output: cols [0:2] actor, col [2] critic
ONES_COL = LANES - 1              # "ones" lane used to fold in the critic bias

# Row layout of the packed small-parameter tile (8, 128):
#   rows 0..3 : w1.T rows  (input feature k -> all 128 output lanes, zero-padded)
#   row 4     : b1 (padded)
#   row 5     : b2 (padded)
#   row 6     : fused head bias [ba | b3] (padded), lane ONES_COL == 1.0
#   row 7     : critic weight row over fused-head lanes [2:27], lane ONES_COL == bc
ROW_B1, ROW_B2, ROW_BF, ROW_WC = 4, 5, 6, 7


def actor_critic_kernel(x_ref, sp_ref, wbig_ref, out_ref):
    x = x_ref[...]                                            # (B, 4)
    sp = sp_ref[...]                                          # (8, 128)

    # F.normalize(x, p=2, dim=0): per-column L2 norm over the batch axis.
    # rsqrt(max(ss, eps^2)) == 1 / max(||x||, eps)   (EUP rsqrt, no divide)
    ss = jnp.sum(x * x, axis=0, keepdims=True)                # (1, 4)
    xn = x * jax.lax.rsqrt(jnp.maximum(ss, 1e-24))

    # Layer 1: (B,4)@(4,128) done as 4 VPU broadcast multiply-adds (skip MXU
    # for K=4; the weight rows live in the packed small-param tile).
    y = xn[:, 0:1] * sp[0:1, :] + sp[ROW_B1:ROW_B1 + 1, :]    # (B, 128)
    for k in range(1, D_IN):
        y = y + xn[:, k:k + 1] * sp[k:k + 1, :]
    y = jnp.maximum(y, 0.0)                                   # padded lanes stay 0

    # Layer 2 (MXU): padded lanes (>=50) stay exactly 0 (zero weight/bias).
    y = jnp.dot(y, wbig_ref[0], preferred_element_type=jnp.float32) \
        + sp[ROW_B2:ROW_B2 + 1, :]
    y = jnp.maximum(y, 0.0)                                   # (B, 128)

    # Fused head (MXU): cols [0:2] = actor logits, [2:27] = l3 pre-activation,
    # lane ONES_COL = 1.0 (bias lane), remaining lanes exactly 0.
    z = jnp.dot(y, wbig_ref[1], preferred_element_type=jnp.float32) \
        + sp[ROW_BF:ROW_BF + 1, :]

    # actor = log_softmax(dim=0): per-column over the batch axis, so computing
    # it on the whole slab is exact for the actor columns (others sliced away).
    z_max = jnp.max(z, axis=0, keepdims=True)                 # (1, 128)
    lse = jnp.log(jnp.sum(jnp.exp(z - z_max), axis=0, keepdims=True))
    log_probs = z - z_max - lse                               # (B, 128)

    # critic: c = relu(l3(y.detach())) lives in cols [2:27] of relu(z); the wc
    # row is zero outside those columns except lane ONES_COL which holds bc,
    # and relu(z)[:, ONES_COL] == 1.0, so a single VPU multiply + lane reduce
    # gives c@wc + bc (replaces the 25->1 MXU matmul and the bc operand).
    h = jnp.maximum(z, 0.0)                                   # (B, 128)
    crit = jnp.sum(h * sp[ROW_WC:ROW_WC + 1, :], axis=-1, keepdims=True)  # (B,1)
    crit = jnp.tanh(crit)

    # Pack both heads into one lane-dense (B, 128) output slab (single select).
    col = jax.lax.broadcasted_iota(jnp.int32, out_ref.shape, 1)
    out_ref[...] = jnp.where(col == CRIT_COL, crit, log_probs)


def prepare_params(params):
    """One-time prep: pack everything into one (8,128) tile + one (2,128,128)."""
    f32 = jnp.float32

    sp = jnp.zeros((8, LANES), f32)
    sp = sp.at[0:D_IN, 0:D_H1].set(params["w1"].T.astype(f32))          # (4,25)
    sp = sp.at[ROW_B1, 0:D_H1].set(params["b1"].astype(f32))
    sp = sp.at[ROW_B2, 0:D_H2].set(params["b2"].astype(f32))
    bf = jnp.concatenate([params["ba"], params["b3"]]).astype(f32)      # (27,)
    sp = sp.at[ROW_BF, 0:D_HEAD].set(bf)
    sp = sp.at[ROW_BF, ONES_COL].set(1.0)                               # ones lane
    sp = sp.at[ROW_WC, D_ACT:D_HEAD].set(params["wc"].reshape(-1).astype(f32))
    sp = sp.at[ROW_WC, ONES_COL].set(params["bc"].reshape(()).astype(f32))

    wbig = jnp.zeros((2, LANES, LANES), f32)
    wbig = wbig.at[0, 0:D_H1, 0:D_H2].set(params["w2"].T.astype(f32))   # l2
    wf = jnp.concatenate([params["wa"].T, params["w3"].T], axis=1).astype(f32)
    wbig = wbig.at[1, 0:D_H2, 0:D_HEAD].set(wf)                         # fused head

    return sp, wbig


def actor_critic_forward(x, prepped):
    """x: (B, 4) float32. prepped: output of prepare_params (done once)."""
    B = x.shape[0]
    vmem = pl.BlockSpec(memory_space=pltpu.MemorySpace.VMEM)

    out = pl.pallas_call(
        actor_critic_kernel,
        out_shape=jax.ShapeDtypeStruct((B, LANES), jnp.float32),
        in_specs=[vmem, vmem, vmem],
        out_specs=vmem,
    )(x, *prepped)

    actor = out[:, :D_ACT]                     # (B, 2) log-probs
    critic = out[:, CRIT_COL:CRIT_COL + 1]     # (B, 1)
    return actor, critic


def make_params(key):
    """Deterministic synthetic parameters with PyTorch nn.Linear shapes."""
    shapes = {
        "w1": (25, 4),  "b1": (25,),
        "w2": (50, 25), "b2": (50,),
        "wa": (2, 50),  "ba": (2,),
        "w3": (25, 50), "b3": (25,),
        "wc": (1, 25),  "bc": (1,),
    }
    params = {}
    keys = jax.random.split(key, len(shapes))
    for k, (name, shp) in zip(keys, shapes.items()):
        fan_in = shp[-1] if len(shp) > 1 else 25
        scale = 1.0 / jnp.sqrt(jnp.float32(fan_in))
        params[name] = jax.random.uniform(
            k, shp, dtype=jnp.float32, minval=-scale, maxval=scale)
    return params


def reference_forward(x, p):
    """Pure-JAX reference mirroring the PyTorch module."""
    norm = jnp.sqrt(jnp.sum(x * x, axis=0, keepdims=True))
    xn = x / jnp.maximum(norm, 1e-12)
    y = jax.nn.relu(xn @ p["w1"].T + p["b1"])
    y = jax.nn.relu(y @ p["w2"].T + p["b2"])
    actor = jax.nn.log_softmax(y @ p["wa"].T + p["ba"], axis=0)
    c = jax.nn.relu(y @ p["w3"].T + p["b3"])
    critic = jnp.tanh(c @ p["wc"].T + p["bc"])
    return actor, critic


if __name__ == "__main__":
    key = jax.random.PRNGKey(0)
    kx, kp = jax.random.split(key)

    B = 2
    x = jax.random.normal(kx, (B, 4), dtype=jnp.float32)
    params = make_params(kp)
    prepped = prepare_params(params)   # one-time, off the per-call path

    actor, critic = actor_critic_forward(x, prepped)
    jax.block_until_ready((actor, critic))

    # Cross-check against the pure-JAX reference.
    actor_ref, critic_ref = reference_forward(x, params)
    assert actor.shape == (B, 2) and critic.shape == (B, 1)
    assert jnp.allclose(actor, actor_ref, atol=1e-5, rtol=1e-5)
    assert jnp.allclose(critic, critic_ref, atol=1e-5, rtol=1e-5)

    print("KERNEL_OK")
</pallas_src>

<mosaic_0001>
module attributes {stable_mosaic.version = 11 : i64} {
  func.func @actor_critic_kernel(%arg0: memref<2x4xf32, #tpu.memory_space<vmem>>, %arg1: memref<8x128xf32, #tpu.memory_space<vmem>>, %arg2: memref<2x128x128xf32, #tpu.memory_space<vmem>>, %arg3: memref<2x128xf32, #tpu.memory_space<vmem>>) attributes {dimension_semantics = [], scalar_prefetch = 0 : i64, scratch_operands = 0 : i64, tpu.core_type = #tpu.core_type<tc>} {
    %c0 = arith.constant 0 : index
    %c0_0 = arith.constant 0 : index
    %0 = vector.load %arg0[%c0, %c0_0] : memref<2x4xf32, #tpu.memory_space<vmem>>, vector<2x4xf32>
    %c0_1 = arith.constant 0 : index
    %c0_2 = arith.constant 0 : index
    %1 = vector.load %arg1[%c0_1, %c0_2] : memref<8x128xf32, #tpu.memory_space<vmem>>, vector<8x128xf32>
    %2 = arith.mulf %0, %0 : vector<2x4xf32>
    %cst = arith.constant dense<0.000000e+00> : vector<4xf32>
    %3 = vector.multi_reduction <add>, %2, %cst [0] : vector<2x4xf32> to vector<4xf32>
    %4 = vector.shape_cast %3 : vector<4xf32> to vector<1x4xf32>
    %cst_3 = arith.constant 1.000000e-24 : f32
    %5 = vector.broadcast %cst_3 : f32 to vector<1x4xf32>
    %6 = arith.maximumf %4, %5 : vector<1x4xf32>
    %7 = math.rsqrt %6 : vector<1x4xf32>
    %8 = vector.broadcast %7 : vector<1x4xf32> to vector<2x4xf32>
    %9 = arith.mulf %0, %8 : vector<2x4xf32>
    %10 = vector.extract_strided_slice %9 {offsets = [0, 0], sizes = [2, 1], strides = [1, 1]} : vector<2x4xf32> to vector<2x1xf32>
    %11 = vector.extract_strided_slice %1 {offsets = [0, 0], sizes = [1, 128], strides = [1, 1]} : vector<8x128xf32> to vector<1x128xf32>
    %12 = vector.broadcast %10 : vector<2x1xf32> to vector<2x128xf32>
    %13 = vector.broadcast %11 : vector<1x128xf32> to vector<2x128xf32>
    %14 = arith.mulf %12, %13 : vector<2x128xf32>
    %15 = vector.extract_strided_slice %1 {offsets = [4, 0], sizes = [1, 128], strides = [1, 1]} : vector<8x128xf32> to vector<1x128xf32>
    %16 = vector.broadcast %15 : vector<1x128xf32> to vector<2x128xf32>
    %17 = arith.addf %14, %16 : vector<2x128xf32>
    %18 = vector.extract_strided_slice %9 {offsets = [0, 1], sizes = [2, 1], strides = [1, 1]} : vector<2x4xf32> to vector<2x1xf32>
    %19 = vector.extract_strided_slice %1 {offsets = [1, 0], sizes = [1, 128], strides = [1, 1]} : vector<8x128xf32> to vector<1x128xf32>
    %20 = vector.broadcast %18 : vector<2x1xf32> to vector<2x128xf32>
    %21 = vector.broadcast %19 : vector<1x128xf32> to vector<2x128xf32>
    %22 = arith.mulf %20, %21 : vector<2x128xf32>
    %23 = arith.addf %17, %22 : vector<2x128xf32>
    %24 = vector.extract_strided_slice %9 {offsets = [0, 2], sizes = [2, 1], strides = [1, 1]} : vector<2x4xf32> to vector<2x1xf32>
    %25 = vector.extract_strided_slice %1 {offsets = [2, 0], sizes = [1, 128], strides = [1, 1]} : vector<8x128xf32> to vector<1x128xf32>
    %26 = vector.broadcast %24 : vector<2x1xf32> to vector<2x128xf32>
    %27 = vector.broadcast %25 : vector<1x128xf32> to vector<2x128xf32>
    %28 = arith.mulf %26, %27 : vector<2x128xf32>
    %29 = arith.addf %23, %28 : vector<2x128xf32>
    %30 = vector.extract_strided_slice %9 {offsets = [0, 3], sizes = [2, 1], strides = [1, 1]} : vector<2x4xf32> to vector<2x1xf32>
    %31 = vector.extract_strided_slice %1 {offsets = [3, 0], sizes = [1, 128], strides = [1, 1]} : vector<8x128xf32> to vector<1x128xf32>
    %32 = vector.broadcast %30 : vector<2x1xf32> to vector<2x128xf32>
    %33 = vector.broadcast %31 : vector<1x128xf32> to vector<2x128xf32>
    %34 = arith.mulf %32, %33 : vector<2x128xf32>
    %35 = arith.addf %29, %34 : vector<2x128xf32>
    %cst_4 = arith.constant 0.000000e+00 : f32
    %36 = vector.broadcast %cst_4 : f32 to vector<2x128xf32>
    %37 = arith.maximumf %35, %36 : vector<2x128xf32>
    %c0_5 = arith.constant 0 : index
    %c0_6 = arith.constant 0 : index
    %c0_7 = arith.constant 0 : index
    %38 = vector.load %arg2[%c0_5, %c0_6, %c0_7] : memref<2x128x128xf32, #tpu.memory_space<vmem>>, vector<1x128x128xf32>
    %39 = vector.shape_cast %38 : vector<1x128x128xf32> to vector<128x128xf32>
    %cst_8 = arith.constant dense<0.000000e+00> : vector<2x128xf32>
    %40 = tpu.matmul %37, %39, %cst_8 {dimension_numbers = #tpu.dot_dimension_numbers<[1], [0], [0], [1], [0, 0, 1, 1], [], []>} : vector<2x128xf32>, vector<128x128xf32>, vector<2x128xf32> -> vector<2x128xf32>
    %41 = vector.extract_strided_slice %1 {offsets = [5, 0], sizes = [1, 128], strides = [1, 1]} : vector<8x128xf32> to vector<1x128xf32>
    %42 = vector.broadcast %41 : vector<1x128xf32> to vector<2x128xf32>
    %43 = arith.addf %40, %42 : vector<2x128xf32>
    %cst_9 = arith.constant 0.000000e+00 : f32
    %44 = vector.broadcast %cst_9 : f32 to vector<2x128xf32>
    %45 = arith.maximumf %43, %44 : vector<2x128xf32>
    %c1 = arith.constant 1 : index
    %c0_10 = arith.constant 0 : index
    %c0_11 = arith.constant 0 : index
    %46 = vector.load %arg2[%c1, %c0_10, %c0_11] : memref<2x128x128xf32, #tpu.memory_space<vmem>>, vector<1x128x128xf32>
    %47 = vector.shape_cast %46 : vector<1x128x128xf32> to vector<128x128xf32>
    %cst_12 = arith.constant dense<0.000000e+00> : vector<2x128xf32>
    %48 = tpu.matmul %45, %47, %cst_12 {dimension_numbers = #tpu.dot_dimension_numbers<[1], [0], [0], [1], [0, 0, 1, 1], [], []>} : vector<2x128xf32>, vector<128x128xf32>, vector<2x128xf32> -> vector<2x128xf32>
    %49 = vector.extract_strided_slice %1 {offsets = [6, 0], sizes = [1, 128], strides = [1, 1]} : vector<8x128xf32> to vector<1x128xf32>
    %50 = vector.broadcast %49 : vector<1x128xf32> to vector<2x128xf32>
    %51 = arith.addf %48, %50 : vector<2x128xf32>
    %cst_13 = arith.constant dense<0xFF800000> : vector<128xf32>
    %52 = vector.multi_reduction <maximumf>, %51, %cst_13 [0] : vector<2x128xf32> to vector<128xf32>
    %53 = vector.shape_cast %52 : vector<128xf32> to vector<1x128xf32>
    %54 = vector.broadcast %53 : vector<1x128xf32> to vector<2x128xf32>
    %55 = arith.subf %51, %54 : vector<2x128xf32>
    %56 = math.exp %55 : vector<2x128xf32>
    %cst_14 = arith.constant dense<0.000000e+00> : vector<128xf32>
    %57 = vector.multi_reduction <add>, %56, %cst_14 [0] : vector<2x128xf32> to vector<128xf32>
    %58 = vector.shape_cast %57 : vector<128xf32> to vector<1x128xf32>
    %59 = math.log %58 : vector<1x128xf32>
    %60 = vector.broadcast %53 : vector<1x128xf32> to vector<2x128xf32>
    %61 = arith.subf %51, %60 : vector<2x128xf32>
    %62 = vector.broadcast %59 : vector<1x128xf32> to vector<2x128xf32>
    %63 = arith.subf %61, %62 : vector<2x128xf32>
    %cst_15 = arith.constant 0.000000e+00 : f32
    %64 = vector.broadcast %cst_15 : f32 to vector<2x128xf32>
    %65 = arith.maximumf %51, %64 : vector<2x128xf32>
    %66 = vector.extract_strided_slice %1 {offsets = [7, 0], sizes = [1, 128], strides = [1, 1]} : vector<8x128xf32> to vector<1x128xf32>
    %67 = vector.broadcast %66 : vector<1x128xf32> to vector<2x128xf32>
    %68 = arith.mulf %65, %67 : vector<2x128xf32>
    %cst_16 = arith.constant dense<0.000000e+00> : vector<2xf32>
    %69 = vector.multi_reduction <add>, %68, %cst_16 [1] : vector<2x128xf32> to vector<2xf32>
    %70 = vector.shape_cast %69 : vector<2xf32> to vector<2x1xf32>
    %71 = math.tanh %70 : vector<2x1xf32>
    %72 = tpu.iota {dimensions = array<i32: 1>} : vector<2x128xi32>
    %c2_i32 = arith.constant 2 : i32
    %73 = vector.broadcast %c2_i32 : i32 to vector<2x128xi32>
    %74 = arith.cmpi eq, %72, %73 : vector<2x128xi32>
    %75 = vector.shape_cast %71 : vector<2x1xf32> to vector<2x1xf32>
    %76 = vector.broadcast %75 : vector<2x1xf32> to vector<2x128xf32>
    %77 = arith.select %74, %76, %63 : vector<2x128xi1>, vector<2x128xf32>
    %c0_17 = arith.constant 0 : index
    %c0_18 = arith.constant 0 : index
    %78 = vector.load %arg3[%c0_17, %c0_18] : memref<2x128xf32, #tpu.memory_space<vmem>>, vector<2x128xf32>
    tpu.vector_store %arg3[%c0_17, %c0_18], %77 {strides = array<i32>} : memref<2x128xf32, #tpu.memory_space<vmem>>, vector<2x128xf32>,
    return
  }
}

</mosaic_0001>

<bundles_post_ra>
// kernel: tpu_custom_call.1
= control target key start
LH: loop header
LB: loop body
LE: loop exit
PB: predicated region body
PF: predicated region fallthrough
CT: control target
= control target key end

     0   :  { %8 = vsyncpa [#allocation3], 0  ;;  %s720_s0 = inlined_call_operand.hbm [shape: f32[2,4], index: 0, kind: input, shape index: {}]   ;;  %s721_s1 = inlined_call_operand.hbm [shape: f32[8,128], index: 1, kind: input, shape index: {}]   ;;  %s722_s2 = inlined_call_operand.hbm [shape: f32[2,128,128], index: 2, kind: input, shape index: {}]   ;;  %s723_s3 = inlined_call_operand.hbm [shape: f32[2,128], index: 3, kind: output, shape index: {}]  }
   0x1   :  { %9 = vsyncpa [#allocation6], 0 }
   0x2   :  { %10 = vsyncpa [#allocation4], 0  ;;  %s618_s12 = smov [#allocation5]   ;;  %s619_s14 = smov [#allocation2]  }
   0x3   :  { %s27_s13 = sshll.u32 %s618_s12, 4  ;;  %s17_s15 = sshll.u32 %s619_s14, 4  ;;  %s28_s13 = int_to_ptr.vmem [resolvable:$true] %s27_s13  ;;  %s18_s15 = int_to_ptr.vmem [resolvable:$true] %s17_s15 }
   0x4   :  { %s524_s18 = scalar_lea.hbm %s721_s1, 128 }
   0x5   :  { %p525_p0 = scmp.ne.s32.totalorder %s721_s1, %s524_s18  ;;  %p528_p1 = scmp.lt.u32.totalorder %s524_s18, %s721_s1 }
   0x7   :  { %p530_p2 = pnand %p528_p1, %p525_p0 }
   0x9   :  { %533 = shalt.err (!%p530_p2)
}
   0xa   :  { %s534_s23 = scalar_lea.vmem %s28_s13, 128  ;;  %p539_p4 = scmp.lt.s32.totalorder %s28_s13, %s28_s13 }
   0xb   :  { %p535_p3 = scmp.ne.s32.totalorder %s28_s13, %s534_s23  ;;  %p540_p5 = scmp.lt.s32.totalorder %s534_s23, %s534_s23 }
   0xd   :  { %p541_p6 = por %p540_p5, %p539_p4 }
   0xf   :  { %p542_p7 = pnand %p541_p6, %p535_p3 }
  0x11   :  { %545 = shalt.err (!%p542_p7)
}
  0x12   :  { %30 = dma.hbm_to_vmem [thread:$0]  %s721_s1, 128, %s28_s13, [#allocation6]  }
  0x13   :  { %s546_s28 = scalar_lea.hbm %s720_s0, 32 }
  0x14   :  { %p547_p8 = scmp.ne.s32.totalorder %s720_s0, %s546_s28  ;;  %p550_p9 = scmp.lt.u32.totalorder %s546_s28, %s720_s0 }
  0x16   :  { %p552_p10 = pnand %p550_p9, %p547_p8 }
  0x18   :  { %555 = shalt.err (!%p552_p10)
}
  0x19   :  { %s556_s6 = scalar_lea.vmem %s18_s15, 32  ;;  %p561_p12 = scmp.lt.s32.totalorder %s18_s15, %s18_s15 }
  0x1a   :  { %p557_p11 = scmp.ne.s32.totalorder %s18_s15, %s556_s6  ;;  %p562_p13 = scmp.lt.s32.totalorder %s556_s6, %s556_s6 }
  0x1c   :  { %p563_p0 = por %p562_p13, %p561_p12 }
  0x1e   :  { %p564_p1 = pnand %p563_p0, %p557_p11 }
  0x20   :  { %567 = shalt.err (!%p564_p1)
}
  0x21   :  { %20 = dma.hbm_to_vmem [thread:$0]  %s720_s0, 32, %s18_s15, [#allocation3]  }
  0x22   :  { %s620_s8 = smov [#allocation7]   ;;  %s568_s12 = scalar_lea.hbm %s722_s2, 4096 }
  0x23   :  { %s36_s9 = sshll.u32 %s620_s8, 4  ;;  %p569_p2 = scmp.ne.s32.totalorder %s722_s2, %s568_s12  ;;  %s37_s9 = int_to_ptr.vmem [resolvable:$true] %s36_s9 }
  0x24   :  { %p572_p3 = scmp.lt.u32.totalorder %s568_s12, %s722_s2 }
  0x26   :  { %p574_p4 = pnand %p572_p3, %p569_p2 }
  0x28   :  { %577 = shalt.err (!%p574_p4)
}
  0x29   :  { %s578_s18 = scalar_lea.vmem %s37_s9, 4096  ;;  %p583_p6 = scmp.lt.s32.totalorder %s37_s9, %s37_s9 }
  0x2a   :  { %p579_p5 = scmp.ne.s32.totalorder %s37_s9, %s578_s18  ;;  %p584_p7 = scmp.lt.s32.totalorder %s578_s18, %s578_s18 }
  0x2c   :  { %p585_p8 = por %p584_p7, %p583_p6 }
  0x2e   :  { %p586_p9 = pnand %p585_p8, %p579_p5 }
  0x30   :  { %589 = shalt.err (!%p586_p9)
}
  0x31   :  { %s621_s0 = smov 128   ;;  %s622_s15 = smov 8  }
  0x32   :  { %42 = dma.hbm_to_vmem [thread:$0]  %s722_s2, 4096, %s37_s9, [#allocation6], %s621_s0, %s621_s0, %s622_s15  }
  0x33   :  { %612 = dma.done.wait [#allocation3], 32  }
  0x34   :  { %613 = vsyncadd [#allocation3], 4294967264 }
  0x35   :  { %614 = dma.done.wait [#allocation6], 4224  }
  0x36   :  { %615 = vsyncadd [#allocation6], 4294963072  ;;  %v623_v0 = vmov 0   ;;  %v624_v1 = vmov 2   ;;  %v625_v2 = vmov 0.0|0.0   ;;  %vm55_vm0 = vcmask 25600  }
  0x37   :  { %511 = vset.pattern.permute.xlu0 %v623_v0  ;;  %513 = vset.pattern.permute.xlu1 %v624_v1  ;;  %v52_v3 = vld [vmem:[#allocation2] sm:$0x3]  ;;  %v112_v4 = vld [vmem:[#allocation7] sm:$0xff]  ;;  %v113_v5 = vld [vmem:[#allocation7 + $0x8] sm:$0xff]  ;;  %v626_v33 = vmov 1   ;;  %v627_v34 = vmov 3   ;;  %v71_v63 = vlaneseq }
  0x38   :  { %450 = vmatprep.subr.bf16.mxu0 %v625_v2  ;;  %474 = vmatprep.subr.bf16.mxu1 %v625_v2  ;;  %v54_v6 = vmul.f32 %v52_v3, %v52_v3  ;;  %v451_v7 = vpack.c.bf16 %v113_v5, %v112_v4  ;;  %v114_v8 = vld [vmem:[#allocation7 + $0x10] sm:$0xff]  ;;  %v115_v9 = vld [vmem:[#allocation7 + $0x18] sm:$0xff]  ;;  %v116_v13 = vld [vmem:[#allocation7 + $0x20] sm:$0xff]  ;;  %vm628_vm1 = vmmov 0   ;;  %v629_v41 = vmov 0.0   ;;  %s630_s2 = smov [#allocation8]  }
  0x39   :  { %v454_v11 = vpack.c.bf16 %v115_v9, %v114_v8  ;;  %v117_v14 = vld [vmem:[#allocation7 + $0x28] sm:$0xff]  ;;  %v118_v18 = vld [vmem:[#allocation7 + $0x30] sm:$0xff]  ;;  %v119_v19 = vld [vmem:[#allocation7 + $0x38] sm:$0xff]  ;;  %412 = vmatprep.mubr.msk.f32.mxu0 %vm628_vm1, %v629_v41  ;;  %447 = vmatprep.mubr.msk.f32.mxu1 %vm628_vm1, %v629_v41  ;;  %v72_v0 = vshrl.u32 %v71_v63, 7  ;;  %vm294_vm2 = vcmask 1041408   ;;  %s336_s21 = sshll.u32 %s630_s2, 4  ;;  %s337_s21 = int_to_ptr.vmem [resolvable:$true] %s336_s21 }
  0x3a   :  { %v56_v10 = vsel %vm55_vm0, %v54_v6, 0.0  ;;  %452 = vmatpush3.bf16.msra.mxu0 %v451_v7  ;;  %v457_v16 = vpack.c.bf16 %v117_v14, %v116_v13  ;;  %v460_v21 = vpack.c.bf16 %v119_v19, %v118_v18  ;;  %v120_v26 = vld [vmem:[#allocation7 + $0x40] sm:$0xff]  ;;  %v121_v27 = vld [vmem:[#allocation7 + $0x48] sm:$0xff]  ;;  %v122_v30 = vld [vmem:[#allocation7 + $0x50] sm:$0xff]  ;;  %s590_s22 = scalar_lea.vmem %s337_s21, 32  ;;  %p595_p11 = scmp.lt.s32.totalorder %s337_s21, %s337_s21 }
  0x3b   :  { %v57_v12 = vrot.slane %v56_v10, 4  ;;  %453 = vmatprep.subr.bf16.mxu0 %v625_v2  ;;  %v463_v29 = vpack.c.bf16 %v121_v27, %v120_v26  ;;  %v123_v31 = vld [vmem:[#allocation7 + $0x58] sm:$0xff]  ;;  %v124_v35 = vld [vmem:[#allocation7 + $0x60] sm:$0xff]  ;;  %v125_v36 = vld [vmem:[#allocation7 + $0x68] sm:$0xff]  ;;  %v73_v1 = vsub.s32 0, %v72_v0  ;;  %v78_v5 = vsub.s32 4, %v72_v0  ;;  %p591_p10 = scmp.ne.s32.totalorder %s337_s21, %s590_s22  ;;  %p596_p12 = scmp.lt.s32.totalorder %s590_s22, %s590_s22 }
  0x3c   :  { %v466_v32 = vpack.c.bf16 %v123_v31, %v122_v30  ;;  %v469_v37 = vpack.c.bf16 %v125_v36, %v124_v35  ;;  %v126_v38 = vld [vmem:[#allocation7 + $0x70] sm:$0xff]  ;;  %v127_v39 = vld [vmem:[#allocation7 + $0x78] sm:$0xff]  ;;  %v204_v42 = vld [vmem:[#allocation7 + $0x80] sm:$0xff]  ;;  %v87_v6 = vsub.s32 1, %v72_v0  ;;  %v97_v8 = vsub.s32 2, %v72_v0 }
  0x3d   :  { %v58_v15 = vadd.f32 %v57_v12, %v56_v10  ;;  %v472_v40 = vpack.c.bf16 %v127_v39, %v126_v38  ;;  %v205_v43 = vld [vmem:[#allocation7 + $0x88] sm:$0xff]  ;;  %v206_v44 = vld [vmem:[#allocation7 + $0x90] sm:$0xff]  ;;  %v207_v46 = vld [vmem:[#allocation7 + $0x98] sm:$0xff]  ;;  %v107_v10 = vsub.s32 3, %v72_v0  ;;  %v318_v36 = vsub.s32 7, %v72_v0  ;;  %p597_p13 = por %p596_p12, %p595_p11 }
  0x3e   :  { %455 = vmatpush3.bf16.msra.mxu0 %v454_v11  ;;  %v475_v45 = vpack.c.bf16 %v205_v43, %v204_v42  ;;  %v478_v47 = vpack.c.bf16 %v207_v46, %v206_v44  ;;  %v208_v48 = vld [vmem:[#allocation7 + $0xa0] sm:$0xff]  ;;  %v209_v49 = vld [vmem:[#allocation7 + $0xa8] sm:$0xff]  ;;  %v210_v51 = vld [vmem:[#allocation7 + $0xb0] sm:$0xff] }
  0x3f   :  { %v59_v17 = vrot.slane %v58_v15, 2  ;;  %456 = vmatprep.subr.bf16.mxu0 %v625_v2  ;;  %v481_v50 = vpack.c.bf16 %v209_v49, %v208_v48  ;;  %v211_v52 = vld [vmem:[#allocation7 + $0xb8] sm:$0xff]  ;;  %v212_v54 = vld [vmem:[#allocation7 + $0xc0] sm:$0xff]  ;;  %v213_v55 = vld [vmem:[#allocation7 + $0xc8] sm:$0xff]  ;;  %p598_p0 = pnand %p597_p13, %p591_p10 }
  0x40   :  { %476 = vmatpush3.bf16.msra.mxu1 %v475_v45  ;;  %v484_v53 = vpack.c.bf16 %v211_v52, %v210_v51  ;;  %v487_v56 = vpack.c.bf16 %v213_v55, %v212_v54  ;;  %v214_v57 = vld [vmem:[#allocation7 + $0xd0] sm:$0xff]  ;;  %v215_v58 = vld [vmem:[#allocation7 + $0xd8] sm:$0xff]  ;;  %v216_v60 = vld [vmem:[#allocation7 + $0xe0] sm:$0xff] }
  0x41   :  { %v60_v20 = vadd.f32 %v59_v17, %v58_v15  ;;  %477 = vmatprep.subr.bf16.mxu1 %v625_v2  ;;  %v490_v59 = vpack.c.bf16 %v215_v58, %v214_v57  ;;  %v217_v61 = vld [vmem:[#allocation7 + $0xe8] sm:$0xff]  ;;  %v219_v26 = vld [vmem:[#allocation7 + $0xf8] sm:$0xff] }
  0x42   :  { %458 = vmatpush3.bf16.msra.mxu0 %v457_v16  ;;  %v493_v62 = vpack.c.bf16 %v217_v61, %v216_v60 }
  0x43   :  { %v61_v22 = vrot.slane %v60_v20, 1  ;;  %459 = vmatprep.subr.bf16.mxu0 %v625_v2 }
  0x44   :  { %479 = vmatpush3.bf16.msra.mxu1 %v478_v47 }
  0x45   :  { %v62_v23 = vadd.f32 %v61_v22, %v60_v20  ;;  %480 = vmatprep.subr.bf16.mxu1 %v625_v2 }
  0x46   :  { %461 = vmatpush3.bf16.msra.mxu0 %v460_v21 }
  0x47   :  { %v63_v24 = vmax.f32 %v62_v23, 1e-24  ;;  %462 = vmatprep.subr.bf16.mxu0 %v625_v2 }
  0x48   :  { %482 = vmatpush3.bf16.msra.mxu1 %v481_v50 }
  0x49   :  { %516 = vrsqrt.f32 %v63_v24  ;;  %483 = vmatprep.subr.bf16.mxu1 %v625_v2 }
  0x4a   :  { %464 = vmatpush3.bf16.msra.mxu0 %v463_v29 }
  0x4b   :  { %465 = vmatprep.subr.bf16.mxu0 %v625_v2 }
  0x4c   :  { %485 = vmatpush3.bf16.msra.mxu1 %v484_v53 }
  0x4d   :  { %486 = vmatprep.subr.bf16.mxu1 %v625_v2 }
  0x4e   :  { %467 = vmatpush3.bf16.msra.mxu0 %v466_v32 }
  0x4f   :  { %468 = vmatprep.subr.bf16.mxu0 %v625_v2 }
  0x50   :  { %488 = vmatpush3.bf16.msra.mxu1 %v487_v56 }
  0x51   :  { %489 = vmatprep.subr.bf16.mxu1 %v625_v2 }
  0x52   :  { %470 = vmatpush3.bf16.msra.mxu0 %v469_v37 }
  0x53   :  { %v517_v25 = vpop.eup %516  ;;  %471 = vmatprep.subr.bf16.mxu0 %v625_v2 }
  0x54   :  { %v65_v28 = vmul.f32 %v517_v25, %v52_v3  ;;  %491 = vmatpush3.bf16.msra.mxu1 %v490_v59  ;;  %v53_v3 = vld [vmem:[#allocation5] sm:$0xff]  ;;  %v218_v25 = vld [vmem:[#allocation7 + $0xf0] sm:$0xff] }
  0x55   :  { %492 = vmatprep.subr.bf16.mxu1 %v625_v2  ;;  %v74_v4 = vrot.slane %v53_v3, %v73_v1  ;;  %v79_v11 = vrot.slane %v53_v3, %v78_v5  ;;  %v88_v13 = vrot.slane %v53_v3, %v87_v6  ;;  %v98_v14 = vrot.slane %v53_v3, %v97_v8 }
  0x56   :  { %68 = vperm.xlu0 %511, %v65_v28   ;;  %92 = vperm.xlu1 %513, %v65_v28   ;;  %v108_v15 = vrot.slane %v53_v3, %v107_v10  ;;  %v496_v27 = vpack.c.bf16 %v219_v26, %v218_v25 }
  0x57   :  { %473 = vmatpush3.bf16.msra.mxu0 %v472_v40  ;;  %v319_v40 = vrot.slane %v53_v3, %v318_v36 }
  0x58   :  { %494 = vmatpush3.bf16.msra.mxu1 %v493_v62 }
  0x59   :  { %495 = vmatprep.subr.bf16.mxu1 %v625_v2 }
  0x5a   :  { %512 = vset.pattern.permute.xlu0 %v626_v33  ;;  %514 = vset.pattern.permute.xlu1 %v627_v34 }
  0x5b   :  { %82 = vperm.xlu0 %512, %v65_v28   ;;  %102 = vperm.xlu1 %514, %v65_v28   ;;  %v130_v28 = vsub.s32 5, %v72_v0 }
  0x5c   :  { %497 = vmatpush3.bf16.msra.mxu1 %v496_v27 }
  0x5d   :  { %v131_v29 = vrot.slane %v53_v3, %v130_v28 }
  0x5f   :  { %515 = vset.pattern.permute.xlu0 %v627_v34  ;;  %v222_v34 = vsub.s32 6, %v72_v0 }
  0x61   :  { %v223_v35 = vrot.slane %v53_v3, %v222_v34  ;;  %v326_v3 = vand.u32 127, %v71_v63 }
  0x63   :  { %vm327_vm3 = vcmp.eq.s32.totalorder %v326_v3, 2 }
  0xd5   :  { %v69_v7 = vpop.permute.xlu0 %68  ;;  %v93_v9 = vpop.permute.xlu1 %92 }
  0xd6   :  { %v75_v12 = vmul.f32 %v74_v4, %v69_v7  ;;  %v99_v19 = vmul.f32 %v98_v14, %v93_v9 }
  0xd8   :  { %v80_v2 = vadd.f32 %v79_v11, %v75_v12 }
  0xda   :  { %v83_v16 = vpop.permute.xlu0 %82  ;;  %v103_v17 = vpop.permute.xlu1 %102 }
  0xdb   :  { %v89_v18 = vmul.f32 %v88_v13, %v83_v16  ;;  %v109_v21 = vmul.f32 %v108_v15, %v103_v17 }
  0xdd   :  { %v90_v20 = vadd.f32 %v89_v18, %v80_v2 }
  0xdf   :  { %v100_v22 = vadd.f32 %v99_v19, %v90_v20 }
  0xe1   :  { %v110_v23 = vadd.f32 %v109_v21, %v100_v22 }
  0xe3   :  { %v111_v24 = vmax.f32 %v110_v23, 0.0 }
  0xe5   :  { %413 = vmatmul.mubr.f32.vlgmr.msra.gmra.mrb[0].mxu0 %v111_v24 }
 0x1b8   :  { %v198_v30 = vpop.f32.mrb[0].mxu0 }
 0x1b9   :  { %v199_v31 = vadd.f32 %v198_v30, %v131_v29  ;;  %v414_v32 = vpop.f32.mrb[1].mxu0 }
 0x1bb   :  { %v202_v33 = vmax.f32 %v199_v31, 0.0 }
 0x1bd   :  { %448 = vmatmul.mubr.f32.vlgmr.msra.gmra.mrb[0].mxu1 %v202_v33 }
 0x290   :  { %v290_v37 = vpop.f32.mrb[0].mxu1 }
 0x291   :  { %v291_v38 = vadd.f32 %v290_v37, %v223_v35  ;;  %v449_v39 = vpop.f32.mrb[1].mxu1 }
 0x293   :  { %v315_v41 = vmax.f32 %v291_v38, 0.0  ;;  %v295_v42 = vsel %vm294_vm2, %v291_v38, -inf }
 0x294   :  { %v296_v43 = vrot.slane %v295_v42, 4 }
 0x295   :  { %v320_v44 = vmul.f32 %v319_v40, %v315_v41 }
 0x296   :  { %v297_v45 = vmax.f32 %v295_v42, %v296_v43 }
 0x297   :  { %v321_v46 = vsel %vm294_vm2, %v320_v44, 0.0 }
 0x298   :  { %322 = vadd.xlane.f32.xlu1 %v321_v46  ;;  %v298_v47 = vrot.slane %v297_v45, 2 }
 0x29a   :  { %v299_v48 = vmax.f32 %v297_v45, %v298_v47 }
 0x29c   :  { %v300_v49 = vrot.slane %v299_v48, 1 }
 0x29e   :  { %v301_v50 = vmax.f32 %v299_v48, %v300_v49 }
 0x2a0   :  { %v302_v51 = vsub.f32 %v291_v38, %v301_v50 }
 0x2a2   :  { %v303_v52 = vmul.f32 1.442695, %v302_v51 }
 0x2a4   :  { %518 = vpow2.f32 %v303_v52 }
 0x2ae   :  { %v519_v53 = vpop.eup %518 }
 0x2af   :  { %v305_v54 = vsel %vm294_vm2, %v519_v53, 0.0 }
 0x2b0   :  { %v306_v55 = vrot.slane %v305_v54, 4 }
 0x2b2   :  { %v307_v56 = vadd.f32 %v306_v55, %v305_v54 }
 0x2b4   :  { %v308_v57 = vrot.slane %v307_v56, 2 }
 0x2b6   :  { %v309_v58 = vadd.f32 %v308_v57, %v307_v56 }
 0x2b8   :  { %v310_v59 = vrot.slane %v309_v58, 1 }
 0x2ba   :  { %v311_v60 = vadd.f32 %v310_v59, %v309_v58 }
 0x2bc   :  { %520 = vlog2.f32 %v311_v60 }
 0x2c6   :  { %v521_v61 = vpop.eup %520 }
 0x2c7   :  { %v313_v62 = vmul.f32 0.6931472, %v521_v61 }
 0x2c9   :  { %v314_v0 = vsub.f32 %v302_v51, %v313_v62 }
 0x325   :  { %v323_v1 = vpop.xlane.xlu1 %322 }
 0x326   :  { %522 = vtanh.f32 %v323_v1 }
 0x330   :  { %v523_v4 = vpop.eup %522 }
 0x331   :  { %v328_v5 = vsel %vm327_vm3, %v523_v4, %v314_v0 }
 0x332   :  { %329 = vst [vmem:[#allocation8] sm:$0x3] %v328_v5 }
 0x333   :  { %601 = shalt.err (!%p598_p0)
}
 0x334   :  { %s602_s25 = scalar_lea.hbm %s723_s3, 32 }
 0x335   :  { %p603_p1 = scmp.ne.s32.totalorder %s723_s3, %s602_s25  ;;  %p606_p2 = scmp.lt.u32.totalorder %s602_s25, %s723_s3 }
 0x337   :  { %p608_p3 = pnand %p606_p2, %p603_p1 }
 0x339   :  { %611 = shalt.err (!%p608_p3)
}
 0x33a   :  { %339 = dma.vmem_to_hbm [thread:$0]  %s337_s21, 32, %s723_s3, [#allocation4]  }
 0x33b   :  { %616 = dma.done.wait [#allocation4], 32  }
 0x33c   :  { %617 = vsyncadd [#allocation4], 4294967264 }
 0x33d   :  { %343 = vsyncpa [#allocation3], 1 }
 0x33e   :  { %344 = vsyncpa [#allocation6], 1 }
 0x33f   :  { %345 = vsyncpa [#allocation4], 1 }

</bundles_post_ra>
